<compile_context>
chip_gen: v7x
topology: tpu7x:2x2x1
jax: 0.10.0
libtpu: 0.0.40
codegen_flags: <defaults>
</compile_context>

<pallas_src>
import numpy as np
import jax
import jax.numpy as jnp
from jax import lax
from jax.experimental import pallas as pl
from jax.experimental.pallas import tpu as pltpu

NUM_LABELS_PER_CATEGORY = (3, 3, 2, 3, 3, 3, 3)
L_TOTAL = sum(NUM_LABELS_PER_CATEGORY)   # 20
L_PAD = 128                              # lane-dense output width
LOSS_COL = L_PAD - 1                     # per-row weighted BCE lives in this lane


def _round_up(x, m):
    return ((x + m - 1) // m) * m


def classifier_kernel(x_ref, labels_ref, wd_ref, bd_ref, wo_ref, bo_ref,
                      wcol_ref, seg_ref, logits_ref, probloss_ref):
    # dropout = identity (eval); dense -> tanh
    x = x_ref[...]
    h = jnp.tanh(
        jnp.dot(x, wd_ref[...], preferred_element_type=jnp.float32) + bd_ref[...])

    # fused 7-head projection, lane-padded to 128 columns (padded cols are 0)
    z = jnp.dot(h, wo_ref[...], preferred_element_type=jnp.float32) + bo_ref[...]
    logits_ref[...] = z                                   # lane-dense store

    # per-category softmax, fused:
    #   one row max (valid shift for every segment), one exp on the full tile,
    #   segment denominators via one block-diagonal ones matmul (MXU).
    m = jnp.max(z, axis=-1, keepdims=True)
    e = jnp.exp(z - m)
    denom = jnp.dot(e, seg_ref[...], preferred_element_type=jnp.float32)
    p = e * pl.reciprocal(denom)

    # BCEWithLogits (numerically stable) on the full tile, reduced with static
    # per-column weights 1/(B*nl) (0 on padded lanes) -> per-row partial loss.
    lbl = labels_ref[...]
    bce = jnp.maximum(z, 0.0) - z * lbl + jnp.log1p(jnp.exp(-jnp.abs(z)))
    row_loss = jnp.sum(bce * wcol_ref[...], axis=-1, keepdims=True)

    # fold the per-row loss into lane LOSS_COL of the prob slab -> one
    # lane-dense store, no separate (1,1) output.
    col = lax.broadcasted_iota(jnp.int32, p.shape, 1)
    probloss_ref[...] = jnp.where(col == LOSS_COL, row_loss, p)


@jax.jit
def multitask_classifier(features, wd, bd, wo, bo, labels):
    B, H_in = features.shape
    H = wd.shape[1]

    # ---- lane/sublane padding (zero padding is exact for the math) ----
    HIN_PAD = _round_up(H_in, 128)
    H_PAD = _round_up(H, 128)
    block_b = min(256, _round_up(B, 8))
    B_PAD = _round_up(B, block_b)

    xp = jnp.zeros((B_PAD, HIN_PAD), jnp.float32).at[:B, :H_in].set(features)
    lp = jnp.zeros((B_PAD, L_PAD), jnp.float32).at[:B, :L_TOTAL].set(labels)
    wdp = jnp.zeros((HIN_PAD, H_PAD), jnp.float32).at[:H_in, :H].set(wd)
    bdp = jnp.zeros((1, H_PAD), jnp.float32).at[:, :H].set(bd)
    wop = jnp.zeros((H_PAD, L_PAD), jnp.float32).at[:H, :L_TOTAL].set(wo)
    bop = jnp.zeros((1, L_PAD), jnp.float32).at[:, :L_TOTAL].set(bo)

    # Static constants: per-column BCE weights and block-diagonal segment-sum
    # matrix (identity on padded lanes keeps denominators nonzero).
    w_np = np.zeros((1, L_PAD), np.float32)
    s_np = np.zeros((L_PAD, L_PAD), np.float32)
    off = 0
    for nl in NUM_LABELS_PER_CATEGORY:
        w_np[0, off:off + nl] = 1.0 / (B * nl)
        s_np[off:off + nl, off:off + nl] = 1.0
        off += nl
    for j in range(L_TOTAL, L_PAD):
        s_np[j, j] = 1.0
    wcol = jnp.asarray(w_np)
    seg = jnp.asarray(s_np)

    const = lambda i: (0, 0)
    tiled = lambda i: (i, 0)

    logits_slab, probloss_slab = pl.pallas_call(
        classifier_kernel,
        out_shape=(
            jax.ShapeDtypeStruct((B_PAD, L_PAD), jnp.float32),   # logits slab
            jax.ShapeDtypeStruct((B_PAD, L_PAD), jnp.float32),   # probs + loss lane
        ),
        grid=(B_PAD // block_b,),
        in_specs=[
            pl.BlockSpec((block_b, HIN_PAD), tiled),   # features
            pl.BlockSpec((block_b, L_PAD), tiled),     # labels
            pl.BlockSpec((HIN_PAD, H_PAD), const),     # dense weight (VMEM-resident)
            pl.BlockSpec((1, H_PAD), const),           # dense bias
            pl.BlockSpec((H_PAD, L_PAD), const),       # fused head weights
            pl.BlockSpec((1, L_PAD), const),           # fused head biases
            pl.BlockSpec((1, L_PAD), const),           # BCE column weights
            pl.BlockSpec((L_PAD, L_PAD), const),       # block-diag segment-sum matrix
        ],
        out_specs=(
            pl.BlockSpec((block_b, L_PAD), tiled),
            pl.BlockSpec((block_b, L_PAD), tiled),
        ),
        compiler_params=pltpu.CompilerParams(
            dimension_semantics=("parallel",)),
    )(xp, lp, wdp, bdp, wop, bop, wcol, seg)

    logits = logits_slab[:B, :L_TOTAL]
    prob = probloss_slab[:B, :L_TOTAL]
    loss = jnp.sum(probloss_slab[:B, LOSS_COL])
    return loss, prob, logits


def synthetic_encoder(input_ids, embed_table):
    # TODO(synk): the real `encoder` is an external pretrained transformer
    # (opaque to this kernel); this is a deterministic stand-in producing
    # `.logits`-like features of shape [B, H_in].
    mask = (input_ids != 1).astype(jnp.float32)          # attention_mask = input_ids.ne(1)
    emb = embed_table[input_ids]                          # [B, S, H_in]
    pooled = (emb * mask[..., None]).sum(axis=1) / jnp.maximum(
        mask.sum(axis=1, keepdims=True), 1.0)
    return pooled


if __name__ == "__main__":
    key = jax.random.PRNGKey(0)
    B, S, VOCAB, H_IN, H = 8, 16, 64, 32, 32
    ks = jax.random.split(key, 7)

    input_ids = jax.random.randint(ks[0], (B, S), 0, VOCAB)
    embed = 0.1 * jax.random.normal(ks[1], (VOCAB, H_IN), jnp.float32)

    # Classifier parameters (deterministic, synthetic):
    wd = 0.1 * jax.random.normal(ks[2], (H_IN, H), jnp.float32)     # dense.weight^T
    bd = 0.1 * jax.random.normal(ks[3], (1, H), jnp.float32)        # dense.bias
    wo = 0.1 * jax.random.normal(ks[4], (H, L_TOTAL), jnp.float32)  # concat of out_proj[i].weight^T
    bo = 0.1 * jax.random.normal(ks[5], (1, L_TOTAL), jnp.float32)  # concat of out_proj[i].bias

    # Binary multilabel targets for BCEWithLogits, concatenated per category.
    labels = jax.random.bernoulli(ks[6], 0.5, (B, L_TOTAL)).astype(jnp.float32)

    features = synthetic_encoder(input_ids, embed)
    loss, prob, logits = multitask_classifier(features, wd, bd, wo, bo, labels)
    jax.block_until_ready((loss, prob, logits))
    print("KERNEL_OK")
</pallas_src>

<mosaic_0001>
module attributes {stable_mosaic.version = 11 : i64} {
  func.func @classifier_kernel(%arg0: i32, %arg1: memref<8x128xf32, #tpu.memory_space<vmem>>, %arg2: memref<8x128xf32, #tpu.memory_space<vmem>>, %arg3: memref<128x128xf32, #tpu.memory_space<vmem>>, %arg4: memref<1x128xf32, #tpu.memory_space<vmem>>, %arg5: memref<128x128xf32, #tpu.memory_space<vmem>>, %arg6: memref<1x128xf32, #tpu.memory_space<vmem>>, %arg7: memref<1x128xf32, #tpu.memory_space<vmem>>, %arg8: memref<128x128xf32, #tpu.memory_space<vmem>>, %arg9: memref<8x128xf32, #tpu.memory_space<vmem>>, %arg10: memref<8x128xf32, #tpu.memory_space<vmem>>) attributes {dimension_semantics = [#tpu.dimension_semantics<parallel>], iteration_bounds = array<i64: 1>, scalar_prefetch = 0 : i64, scratch_operands = 0 : i64, tpu.core_type = #tpu.core_type<tc>, window_params = [{transform_indices = @transform_0, window_bounds = array<i64: 8, 128>}, {transform_indices = @transform_1, window_bounds = array<i64: 8, 128>}, {pipeline_mode = #tpu.pipeline_mode<synchronous>, transform_indices = @transform_2, window_bounds = array<i64: 128, 128>}, {pipeline_mode = #tpu.pipeline_mode<synchronous>, transform_indices = @transform_3, window_bounds = array<i64: 1, 128>}, {pipeline_mode = #tpu.pipeline_mode<synchronous>, transform_indices = @transform_4, window_bounds = array<i64: 128, 128>}, {pipeline_mode = #tpu.pipeline_mode<synchronous>, transform_indices = @transform_5, window_bounds = array<i64: 1, 128>}, {pipeline_mode = #tpu.pipeline_mode<synchronous>, transform_indices = @transform_6, window_bounds = array<i64: 1, 128>}, {pipeline_mode = #tpu.pipeline_mode<synchronous>, transform_indices = @transform_7, window_bounds = array<i64: 128, 128>}, {transform_indices = @transform_8, window_bounds = array<i64: 8, 128>}, {transform_indices = @transform_9, window_bounds = array<i64: 8, 128>}]} {
    %c0 = arith.constant 0 : index
    %c0_0 = arith.constant 0 : index
    %0 = vector.load %arg1[%c0, %c0_0] : memref<8x128xf32, #tpu.memory_space<vmem>>, vector<8x128xf32>
    %c0_1 = arith.constant 0 : index
    %c0_2 = arith.constant 0 : index
    %1 = vector.load %arg3[%c0_1, %c0_2] : memref<128x128xf32, #tpu.memory_space<vmem>>, vector<128x128xf32>
    %cst = arith.constant dense<0.000000e+00> : vector<8x128xf32>
    %2 = tpu.matmul %0, %1, %cst {dimension_numbers = #tpu.dot_dimension_numbers<[1], [0], [0], [1], [0, 0, 1, 1], [], []>} : vector<8x128xf32>, vector<128x128xf32>, vector<8x128xf32> -> vector<8x128xf32>
    %c0_3 = arith.constant 0 : index
    %c0_4 = arith.constant 0 : index
    %3 = vector.load %arg4[%c0_3, %c0_4] : memref<1x128xf32, #tpu.memory_space<vmem>>, vector<1x128xf32>
    %4 = vector.broadcast %3 : vector<1x128xf32> to vector<8x128xf32>
    %5 = arith.addf %2, %4 : vector<8x128xf32>
    %6 = math.tanh %5 : vector<8x128xf32>
    %c0_5 = arith.constant 0 : index
    %c0_6 = arith.constant 0 : index
    %7 = vector.load %arg5[%c0_5, %c0_6] : memref<128x128xf32, #tpu.memory_space<vmem>>, vector<128x128xf32>
    %cst_7 = arith.constant dense<0.000000e+00> : vector<8x128xf32>
    %8 = tpu.matmul %6, %7, %cst_7 {dimension_numbers = #tpu.dot_dimension_numbers<[1], [0], [0], [1], [0, 0, 1, 1], [], []>} : vector<8x128xf32>, vector<128x128xf32>, vector<8x128xf32> -> vector<8x128xf32>
    %c0_8 = arith.constant 0 : index
    %c0_9 = arith.constant 0 : index
    %9 = vector.load %arg6[%c0_8, %c0_9] : memref<1x128xf32, #tpu.memory_space<vmem>>, vector<1x128xf32>
    %10 = vector.broadcast %9 : vector<1x128xf32> to vector<8x128xf32>
    %11 = arith.addf %8, %10 : vector<8x128xf32>
    %c0_10 = arith.constant 0 : index
    %c0_11 = arith.constant 0 : index
    %12 = vector.load %arg9[%c0_10, %c0_11] : memref<8x128xf32, #tpu.memory_space<vmem>>, vector<8x128xf32>
    tpu.vector_store %arg9[%c0_10, %c0_11], %11 {strides = array<i32>} : memref<8x128xf32, #tpu.memory_space<vmem>>, vector<8x128xf32>,
    %cst_12 = arith.constant dense<0xFF800000> : vector<8xf32>
    %13 = vector.multi_reduction <maximumf>, %11, %cst_12 [1] : vector<8x128xf32> to vector<8xf32>
    %14 = vector.shape_cast %13 : vector<8xf32> to vector<8x1xf32>
    %15 = vector.broadcast %14 : vector<8x1xf32> to vector<8x128xf32>
    %16 = arith.subf %11, %15 : vector<8x128xf32>
    %17 = math.exp %16 : vector<8x128xf32>
    %c0_13 = arith.constant 0 : index
    %c0_14 = arith.constant 0 : index
    %18 = vector.load %arg8[%c0_13, %c0_14] : memref<128x128xf32, #tpu.memory_space<vmem>>, vector<128x128xf32>
    %cst_15 = arith.constant dense<0.000000e+00> : vector<8x128xf32>
    %19 = tpu.matmul %17, %18, %cst_15 {dimension_numbers = #tpu.dot_dimension_numbers<[1], [0], [0], [1], [0, 0, 1, 1], [], []>} : vector<8x128xf32>, vector<128x128xf32>, vector<8x128xf32> -> vector<8x128xf32>
    %20 = tpu.reciprocal %19 : vector<8x128xf32> -> vector<8x128xf32>
    %21 = arith.mulf %17, %20 : vector<8x128xf32>
    %c0_16 = arith.constant 0 : index
    %c0_17 = arith.constant 0 : index
    %22 = vector.load %arg2[%c0_16, %c0_17] : memref<8x128xf32, #tpu.memory_space<vmem>>, vector<8x128xf32>
    %cst_18 = arith.constant 0.000000e+00 : f32
    %23 = vector.broadcast %cst_18 : f32 to vector<8x128xf32>
    %24 = arith.maximumf %11, %23 : vector<8x128xf32>
    %25 = arith.mulf %11, %22 : vector<8x128xf32>
    %26 = arith.subf %24, %25 : vector<8x128xf32>
    %27 = math.absf %11 : vector<8x128xf32>
    %cst_19 = arith.constant 0.000000e+00 : f32
    %28 = vector.broadcast %cst_19 : f32 to vector<8x128xf32>
    %29 = arith.subf %28, %27 : vector<8x128xf32>
    %30 = math.exp %29 : vector<8x128xf32>
    %31 = math.log1p %30 : vector<8x128xf32>
    %32 = arith.addf %26, %31 : vector<8x128xf32>
    %c0_20 = arith.constant 0 : index
    %c0_21 = arith.constant 0 : index
    %33 = vector.load %arg7[%c0_20, %c0_21] : memref<1x128xf32, #tpu.memory_space<vmem>>, vector<1x128xf32>
    %34 = vector.broadcast %33 : vector<1x128xf32> to vector<8x128xf32>
    %35 = arith.mulf %32, %34 : vector<8x128xf32>
    %cst_22 = arith.constant dense<0.000000e+00> : vector<8xf32>
    %36 = vector.multi_reduction <add>, %35, %cst_22 [1] : vector<8x128xf32> to vector<8xf32>
    %37 = vector.shape_cast %36 : vector<8xf32> to vector<8x1xf32>
    %38 = tpu.iota {dimensions = array<i32: 1>} : vector<8x128xi32>
    %c127_i32 = arith.constant 127 : i32
    %39 = vector.broadcast %c127_i32 : i32 to vector<8x128xi32>
    %40 = arith.cmpi eq, %38, %39 : vector<8x128xi32>
    %41 = vector.shape_cast %37 : vector<8x1xf32> to vector<8x1xf32>
    %42 = vector.broadcast %41 : vector<8x1xf32> to vector<8x128xf32>
    %43 = arith.select %40, %42, %21 : vector<8x128xi1>, vector<8x128xf32>
    %c0_23 = arith.constant 0 : index
    %c0_24 = arith.constant 0 : index
    %44 = vector.load %arg10[%c0_23, %c0_24] : memref<8x128xf32, #tpu.memory_space<vmem>>, vector<8x128xf32>
    tpu.vector_store %arg10[%c0_23, %c0_24], %43 {strides = array<i32>} : memref<8x128xf32, #tpu.memory_space<vmem>>, vector<8x128xf32>,
    return
  }
  func.func @transform_0(%arg0: i32) -> (i32, i32) {
    %c0_i32 = arith.constant 0 : i32
    %c0_i32_0 = arith.constant 0 : i32
    return %arg0, %c0_i32 : i32, i32
  }
  func.func @transform_1(%arg0: i32) -> (i32, i32) {
    %c0_i32 = arith.constant 0 : i32
    %c0_i32_0 = arith.constant 0 : i32
    return %arg0, %c0_i32 : i32, i32
  }
  func.func @transform_2(%arg0: i32) -> (i32, i32) {
    %c0_i32 = arith.constant 0 : i32
    %c0_i32_0 = arith.constant 0 : i32
    %c0_i32_1 = arith.constant 0 : i32
    return %c0_i32, %c0_i32_0 : i32, i32
  }
  func.func @transform_3(%arg0: i32) -> (i32, i32) {
    %c0_i32 = arith.constant 0 : i32
    %c0_i32_0 = arith.constant 0 : i32
    %c0_i32_1 = arith.constant 0 : i32
    return %c0_i32, %c0_i32_0 : i32, i32
  }
  func.func @transform_4(%arg0: i32) -> (i32, i32) {
    %c0_i32 = arith.constant 0 : i32
    %c0_i32_0 = arith.constant 0 : i32
    %c0_i32_1 = arith.constant 0 : i32
    return %c0_i32, %c0_i32_0 : i32, i32
  }
  func.func @transform_5(%arg0: i32) -> (i32, i32) {
    %c0_i32 = arith.constant 0 : i32
    %c0_i32_0 = arith.constant 0 : i32
    %c0_i32_1 = arith.constant 0 : i32
    return %c0_i32, %c0_i32_0 : i32, i32
  }
  func.func @transform_6(%arg0: i32) -> (i32, i32) {
    %c0_i32 = arith.constant 0 : i32
    %c0_i32_0 = arith.constant 0 : i32
    %c0_i32_1 = arith.constant 0 : i32
    return %c0_i32, %c0_i32_0 : i32, i32
  }
  func.func @transform_7(%arg0: i32) -> (i32, i32) {
    %c0_i32 = arith.constant 0 : i32
    %c0_i32_0 = arith.constant 0 : i32
    %c0_i32_1 = arith.constant 0 : i32
    return %c0_i32, %c0_i32_0 : i32, i32
  }
  func.func @transform_8(%arg0: i32) -> (i32, i32) {
    %c0_i32 = arith.constant 0 : i32
    %c0_i32_0 = arith.constant 0 : i32
    return %arg0, %c0_i32 : i32, i32
  }
  func.func @transform_9(%arg0: i32) -> (i32, i32) {
    %c0_i32 = arith.constant 0 : i32
    %c0_i32_0 = arith.constant 0 : i32
    return %arg0, %c0_i32 : i32, i32
  }
}

</mosaic_0001>

<bundles_post_ra>
// kernel: multitask_classifier.1
= control target key start
LH: loop header
LB: loop body
LE: loop exit
PB: predicated region body
PF: predicated region fallthrough
CT: control target
= control target key end

     0   :  { %v634_v3 = vmov 0.0|0.0   ;;  %vm635_vm0 = vmmov 0   ;;  %v636_v6 = vmov 0.0   ;;  %s892_s0 = inlined_call_operand.vmem [shape: f32[8,128], index: 0, kind: input, shape index: {}]   ;;  %s893_s1 = inlined_call_operand.vmem [shape: f32[8,128], index: 1, kind: input, shape index: {}]   ;;  %s894_s2 = inlined_call_operand.vmem [shape: f32[128,128], index: 2, kind: input, shape index: {}]   ;;  %s895_s3 = inlined_call_operand.vmem [shape: f32[1,128], index: 3, kind: input, shape index: {}]   ;;  %s896_s4 = inlined_call_operand.vmem [shape: f32[128,128], index: 4, kind: input, shape index: {}]   ;;  %s897_s5 = inlined_call_operand.vmem [shape: f32[1,128], index: 5, kind: input, shape index: {}]   ;;  %s898_s6 = inlined_call_operand.vmem [shape: f32[1,128], index: 6, kind: input, shape index: {}]   ;;  %s899_s7 = inlined_call_operand.vmem [shape: f32[128,128], index: 7, kind: input, shape index: {}]   ;;  %s900_s8 = inlined_call_operand.hbm [shape: f32[8,128], index: 8, kind: output, shape index: {0}]   ;;  %s901_s9 = inlined_call_operand.vmem [shape: f32[8,128], index: 9, kind: output, shape index: {1}]  }
   0x1   :  { %v33_v0 = vld [vmem:[%s894_s2] sm:$0xff]  ;;  %v34_v1 = vld [vmem:[%s894_s2 + $0x8] sm:$0xff]  ;;  %v35_v2 = vld [vmem:[%s894_s2 + $0x10] sm:$0xff]  ;;  %524 = vmatprep.subr.bf16.mxu0 %v634_v3  ;;  %451 = vmatprep.mubr.msk.f32.mxu0 %vm635_vm0, %v636_v6 }
   0x2   :  { %v525_v4 = vpack.c.bf16 %v34_v1, %v33_v0  ;;  %v36_v5 = vld [vmem:[%s894_s2 + $0x18] sm:$0xff]  ;;  %548 = vmatprep.subr.bf16.mxu1 %v634_v3  ;;  %486 = vmatprep.mubr.msk.f32.mxu1 %vm635_vm0, %v636_v6  ;;  %v37_v8 = vld [vmem:[%s894_s2 + $0x20] sm:$0xff]  ;;  %v38_v9 = vld [vmem:[%s894_s2 + $0x28] sm:$0xff] }
   0x3   :  { %v528_v7 = vpack.c.bf16 %v36_v5, %v35_v2  ;;  %v127_v10 = vld [vmem:[%s896_s4] sm:$0xff]  ;;  %v128_v11 = vld [vmem:[%s896_s4 + $0x8] sm:$0xff]  ;;  %v129_v12 = vld [vmem:[%s896_s4 + $0x10] sm:$0xff]  ;;  %v531_v14 = vpack.c.bf16 %v38_v9, %v37_v8 }
   0x4   :  { %526 = vmatpush3.bf16.msra.mxu0 %v525_v4  ;;  %v130_v13 = vld [vmem:[%s896_s4 + $0x18] sm:$0xff]  ;;  %v549_v15 = vpack.c.bf16 %v128_v11, %v127_v10  ;;  %v39_v16 = vld [vmem:[%s894_s2 + $0x30] sm:$0xff] }
   0x5   :  { %527 = vmatprep.subr.bf16.mxu0 %v634_v3  ;;  %v40_v17 = vld [vmem:[%s894_s2 + $0x38] sm:$0xff]  ;;  %v552_v18 = vpack.c.bf16 %v130_v13, %v129_v12 }
   0x6   :  { %550 = vmatpush3.bf16.msra.mxu1 %v549_v15 }
   0x8   :  { %529 = vmatpush3.bf16.msra.mxu0 %v528_v7 }
   0x9   :  { %530 = vmatprep.subr.bf16.mxu0 %v634_v3 }
   0xa   :  { %15 = vsyncpa [#allocation3], 0  ;;  %551 = vmatprep.subr.bf16.mxu1 %v634_v3  ;;  %v131_v19 = vld [vmem:[%s896_s4 + $0x20] sm:$0xff]  ;;  %v132_v20 = vld [vmem:[%s896_s4 + $0x28] sm:$0xff]  ;;  %v534_v21 = vpack.c.bf16 %v40_v17, %v39_v16 }
   0xb   :  { %v41_v22 = vld [vmem:[%s894_s2 + $0x40] sm:$0xff]  ;;  %v42_v23 = vld [vmem:[%s894_s2 + $0x48] sm:$0xff]  ;;  %553 = vmatpush3.bf16.msra.mxu1 %v552_v18  ;;  %v555_v24 = vpack.c.bf16 %v132_v20, %v131_v19  ;;  %v133_v25 = vld [vmem:[%s896_s4 + $0x30] sm:$0xff] }
   0xc   :  { %532 = vmatpush3.bf16.msra.mxu0 %v531_v14  ;;  %554 = vmatprep.subr.bf16.mxu1 %v634_v3  ;;  %v134_v26 = vld [vmem:[%s896_s4 + $0x38] sm:$0xff]  ;;  %v537_v27 = vpack.c.bf16 %v42_v23, %v41_v22  ;;  %v43_v28 = vld [vmem:[%s894_s2 + $0x50] sm:$0xff]  ;;  %v135_v31 = vld [vmem:[%s896_s4 + $0x40] sm:$0xff] }
   0xd   :  { %533 = vmatprep.subr.bf16.mxu0 %v634_v3  ;;  %v44_v29 = vld [vmem:[%s894_s2 + $0x58] sm:$0xff]  ;;  %v558_v30 = vpack.c.bf16 %v134_v26, %v133_v25  ;;  %v136_v32 = vld [vmem:[%s896_s4 + $0x48] sm:$0xff]  ;;  %v45_v34 = vld [vmem:[%s894_s2 + $0x60] sm:$0xff] }
   0xe   :  { %v540_v33 = vpack.c.bf16 %v44_v29, %v43_v28  ;;  %v46_v35 = vld [vmem:[%s894_s2 + $0x68] sm:$0xff]  ;;  %v561_v36 = vpack.c.bf16 %v136_v32, %v135_v31  ;;  %v47_v38 = vld [vmem:[%s894_s2 + $0x70] sm:$0xff]  ;;  %v48_v39 = vld [vmem:[%s894_s2 + $0x78] sm:$0xff] }
   0xf   :  { %556 = vmatpush3.bf16.msra.mxu1 %v555_v24  ;;  %v543_v37 = vpack.c.bf16 %v46_v35, %v45_v34  ;;  %v546_v40 = vpack.c.bf16 %v48_v39, %v47_v38  ;;  %v32_v41 = vld [vmem:[%s892_s0] sm:$0xff]  ;;  %v137_v42 = vld [vmem:[%s896_s4 + $0x50] sm:$0xff]  ;;  %v138_v43 = vld [vmem:[%s896_s4 + $0x58] sm:$0xff] }
  0x10   :  { %535 = vmatpush3.bf16.msra.mxu0 %v534_v21  ;;  %557 = vmatprep.subr.bf16.mxu1 %v634_v3  ;;  %v564_v44 = vpack.c.bf16 %v138_v43, %v137_v42  ;;  %v139_v45 = vld [vmem:[%s896_s4 + $0x60] sm:$0xff]  ;;  %v140_v46 = vld [vmem:[%s896_s4 + $0x68] sm:$0xff]  ;;  %v141_v48 = vld [vmem:[%s896_s4 + $0x70] sm:$0xff] }
  0x11   :  { %536 = vmatprep.subr.bf16.mxu0 %v634_v3  ;;  %v567_v47 = vpack.c.bf16 %v140_v46, %v139_v45  ;;  %v142_v49 = vld [vmem:[%s896_s4 + $0x78] sm:$0xff]  ;;  %v365_v51 = vld [vmem:[%s895_s3] ss:$0 sm:$0xff]  ;;  %v227_v57 = vld [vmem:[%s899_s7 + $0x8] sm:$0xff] }
  0x12   :  { %v570_v50 = vpack.c.bf16 %v142_v49, %v141_v48  ;;  %v226_v56 = vld [vmem:[%s899_s7] sm:$0xff]  ;;  %v228_v58 = vld [vmem:[%s899_s7 + $0x10] sm:$0xff]  ;;  %v229_v60 = vld [vmem:[%s899_s7 + $0x18] sm:$0xff] }
  0x13   :  { %559 = vmatpush3.bf16.msra.mxu1 %v558_v30  ;;  %v573_v59 = vpack.c.bf16 %v227_v57, %v226_v56  ;;  %v576_v61 = vpack.c.bf16 %v229_v60, %v228_v58  ;;  %v230_v62 = vld [vmem:[%s899_s7 + $0x20] sm:$0xff]  ;;  %v231_v63 = vld [vmem:[%s899_s7 + $0x28] sm:$0xff]  ;;  %v232_v1 = vld [vmem:[%s899_s7 + $0x30] sm:$0xff] }
  0x14   :  { %538 = vmatpush3.bf16.msra.mxu0 %v537_v27  ;;  %560 = vmatprep.subr.bf16.mxu1 %v634_v3  ;;  %v579_v0 = vpack.c.bf16 %v231_v63, %v230_v62  ;;  %v233_v2 = vld [vmem:[%s899_s7 + $0x38] sm:$0xff]  ;;  %v366_v5 = vld [vmem:[%s897_s5] ss:$0 sm:$0xff]  ;;  %v235_v13 = vld [vmem:[%s899_s7 + $0x48] sm:$0xff] }
  0x15   :  { %539 = vmatprep.subr.bf16.mxu0 %v634_v3  ;;  %v582_v4 = vpack.c.bf16 %v233_v2, %v232_v1  ;;  %v234_v12 = vld [vmem:[%s899_s7 + $0x40] sm:$0xff]  ;;  %v236_v15 = vld [vmem:[%s899_s7 + $0x50] sm:$0xff]  ;;  %v237_v16 = vld [vmem:[%s899_s7 + $0x58] sm:$0xff] }
  0x16   :  { %v585_v14 = vpack.c.bf16 %v235_v13, %v234_v12  ;;  %v588_v18 = vpack.c.bf16 %v237_v16, %v236_v15  ;;  %v238_v20 = vld [vmem:[%s899_s7 + $0x60] sm:$0xff]  ;;  %v239_v21 = vld [vmem:[%s899_s7 + $0x68] sm:$0xff]  ;;  %v240_v23 = vld [vmem:[%s899_s7 + $0x70] sm:$0xff] }
  0x17   :  { %562 = vmatpush3.bf16.msra.mxu1 %v561_v36  ;;  %v591_v22 = vpack.c.bf16 %v239_v21, %v238_v20  ;;  %v241_v24 = vld [vmem:[%s899_s7 + $0x78] sm:$0xff]  ;;  %v314_v27 = vld [vmem:[%s893_s1] sm:$0xff]  ;;  %s637_s1 = smov [#allocation2]  }
  0x18   :  { %541 = vmatpush3.bf16.msra.mxu0 %v540_v33  ;;  %563 = vmatprep.subr.bf16.mxu1 %v634_v3  ;;  %v594_v26 = vpack.c.bf16 %v241_v24, %v240_v23  ;;  %s353_s21 = sshll.u32 %s637_s1, 4  ;;  %s354_s21 = int_to_ptr.vmem [resolvable:$true] %s353_s21 }
  0x19   :  { %542 = vmatprep.subr.bf16.mxu0 %v634_v3  ;;  %s610_s2 = scalar_lea.vmem %s354_s21, 128  ;;  %p615_p1 = scmp.lt.s32.totalorder %s354_s21, %s354_s21 }
  0x1a   :  { %p611_p0 = scmp.ne.s32.totalorder %s354_s21, %s610_s2  ;;  %p616_p2 = scmp.lt.s32.totalorder %s610_s2, %s610_s2 }
  0x1b   :  { %565 = vmatpush3.bf16.msra.mxu1 %v564_v44 }
  0x1c   :  { %544 = vmatpush3.bf16.msra.mxu0 %v543_v37  ;;  %566 = vmatprep.subr.bf16.mxu1 %v634_v3  ;;  %v367_v37 = vld [vmem:[%s898_s6] ss:$0 sm:$0xff]  ;;  %p617_p3 = por %p616_p2, %p615_p1 }
  0x1d   :  { %545 = vmatprep.subr.bf16.mxu0 %v634_v3 }
  0x1e   :  { %p618_p4 = pnand %p617_p3, %p611_p0 }
  0x1f   :  { %568 = vmatpush3.bf16.msra.mxu1 %v567_v47 }
  0x20   :  { %547 = vmatpush3.bf16.msra.mxu0 %v546_v40  ;;  %569 = vmatprep.subr.bf16.mxu1 %v634_v3 }
  0x21   :  { %572 = vmatprep.subr.bf16.mxu0 %v634_v3 }
  0x23   :  { %452 = vmatmul.mubr.f32.vlgmr.msra.gmra.mrb[0].mxu0 %v32_v41  ;;  %571 = vmatpush3.bf16.msra.mxu1 %v570_v50 }
  0x24   :  { %521 = vmatprep.mubr.msk.f32.mxu0 %vm635_vm0, %v636_v6  ;;  %574 = vmatpush3.bf16.msra.mxu0 %v573_v59 }
  0x25   :  { %575 = vmatprep.subr.bf16.mxu0 %v634_v3 }
  0x28   :  { %577 = vmatpush3.bf16.msra.mxu0 %v576_v61 }
  0x29   :  { %578 = vmatprep.subr.bf16.mxu0 %v634_v3 }
  0x2c   :  { %580 = vmatpush3.bf16.msra.mxu0 %v579_v0 }
  0x2d   :  { %581 = vmatprep.subr.bf16.mxu0 %v634_v3 }
  0x30   :  { %583 = vmatpush3.bf16.msra.mxu0 %v582_v4 }
  0x31   :  { %584 = vmatprep.subr.bf16.mxu0 %v634_v3 }
  0x34   :  { %586 = vmatpush3.bf16.msra.mxu0 %v585_v14 }
  0x35   :  { %587 = vmatprep.subr.bf16.mxu0 %v634_v3 }
  0x38   :  { %589 = vmatpush3.bf16.msra.mxu0 %v588_v18 }
  0x39   :  { %590 = vmatprep.subr.bf16.mxu0 %v634_v3 }
  0x3c   :  { %592 = vmatpush3.bf16.msra.mxu0 %v591_v22 }
  0x3d   :  { %593 = vmatprep.subr.bf16.mxu0 %v634_v3 }
  0x40   :  { %595 = vmatpush3.bf16.msra.mxu0 %v594_v26 }
  0xf6   :  { %v122_v52 = vpop.f32.mrb[0].mxu0 }
  0xf7   :  { %v123_v53 = vadd.f32 %v365_v51, %v122_v52  ;;  %v453_v54 = vpop.f32.mrb[1].mxu0 }
  0xf9   :  { %600 = vtanh.f32 %v123_v53 }
 0x103   :  { %v601_v55 = vpop.eup %600 }
 0x104   :  { %487 = vmatmul.mubr.f32.vlgmr.msra.gmra.mrb[0].mxu1 %v601_v55 }
 0x1d7   :  { %v216_v6 = vpop.f32.mrb[0].mxu1 }
 0x1d8   :  { %v217_v7 = vadd.f32 %v366_v5, %v216_v6  ;;  %v488_v8 = vpop.f32.mrb[1].mxu1 }
 0x1da   :  { %v318_v9 = vand.u32 2147483647, %v217_v7  ;;  %220 = vst [vmem:[#allocation2] sm:$0xff] %v217_v7  ;;  %221 = vmax.xlane.f32.xlu0 %v217_v7  ;;  %v315_v29 = vmax.f32 %v217_v7, 0.0  ;;  %v316_v30 = vmul.f32 %v314_v27, %v217_v7 }
 0x1dc   :  { %v319_v10 = vsub.f32 0.0, %v318_v9  ;;  %v317_v35 = vsub.f32 %v315_v29, %v316_v30 }
 0x1de   :  { %v320_v11 = vmul.f32 1.442695, %v319_v10 }
 0x1e0   :  { %602 = vpow2.f32 %v320_v11 }
 0x1ea   :  { %v603_v17 = vpop.eup %602 }
 0x1eb   :  { %v322_v19 = vadd.f32 1.0, %v603_v17  ;;  %v325_v25 = vmul.f32 -0.5, %v603_v17  ;;  %v328_v31 = vand.u32 2147483647, %v603_v17 }
 0x1ed   :  { %604 = vlog2.f32 %v322_v19  ;;  %v326_v28 = vadd.f32 1.0, %v325_v25  ;;  %vm329_vm1 = vcmp.lt.f32.partialorder %v328_v31, 0.0004427343 }
 0x1ef   :  { %v327_v34 = vmul.f32 %v603_v17, %v326_v28 }
 0x1f7   :  { %v605_v32 = vpop.eup %604 }
 0x1f8   :  { %v324_v33 = vmul.f32 0.6931472, %v605_v32 }
 0x1fa   :  { %v330_v36 = vsel %vm329_vm1, %v327_v34, %v324_v33 }
 0x1fb   :  { %v331_v3 = vadd.f32 %v330_v36, %v317_v35 }
 0x1fd   :  { %v339_v38 = vmul.f32 %v367_v37, %v331_v3 }
 0x1ff   :  { %340 = vadd.xlane.f32.xlu0 %v339_v38 }
 0x267   :  { %v222_v39 = vpop.xlane.xlu0 %221 }
 0x268   :  { %v223_v40 = vsub.f32 %v217_v7, %v222_v39 }
 0x26a   :  { %v224_v41 = vmul.f32 1.442695, %v223_v40 }
 0x26c   :  { %606 = vpow2.f32 %v224_v41 }
 0x276   :  { %v607_v42 = vpop.eup %606 }
 0x277   :  { %522 = vmatmul.mubr.f32.vlgmr.msra.gmra.mrb[2].mxu0 %v607_v42 }
 0x278   :  { %621 = shalt.err (!%p618_p4)
}
 0x279   :  { %s622_s23 = scalar_lea.hbm %s900_s8, 128 }
 0x27a   :  { %p623_p5 = scmp.ne.s32.totalorder %s900_s8, %s622_s23  ;;  %p626_p6 = scmp.lt.u32.totalorder %s622_s23, %s900_s8 }
 0x27c   :  { %p628_p7 = pnand %p626_p6, %p623_p5 }
 0x27e   :  { %631 = shalt.err (!%p628_p7)
}
 0x27f   :  { %356 = dma.vmem_to_hbm [thread:$0]  %s354_s21, 128, %s900_s8, [#allocation3]   ;;  %v342_v45 = vlaneseq }
 0x281   :  { %v343_v46 = vand.u32 127, %v342_v45 }
 0x283   :  { %vm344_vm2 = vcmp.eq.s32.totalorder %v343_v46, 127 }
 0x28c   :  { %v341_v49 = vpop.xlane.xlu0 %340 }
 0x34a   :  { %v308_v43 = vpop.f32.mrb[2].mxu0 }
 0x34b   :  { %608 = vrcp.f32 %v308_v43  ;;  %v523_v44 = vpop.f32.mrb[3].mxu0 }
 0x355   :  { %v609_v47 = vpop.eup %608 }
 0x356   :  { %v313_v48 = vmul.f32 %v609_v47, %v607_v42 }
 0x358   :  { %v345_v50 = vsel %vm344_vm2, %v341_v49, %v313_v48 }
 0x359   :  { %346 = vst [vmem:[%s901_s9] sm:$0xff] %v345_v50 }
 0x35a   :  { %632 = dma.done.wait [#allocation3], 128  }
 0x35b   :  { %633 = vsyncadd [#allocation3], 4294967168 }
 0x35c   :  { %364 = vsyncpa [#allocation3], 1 }

</bundles_post_ra>
